<compile_context>
chip_gen: v7x
topology: tpu7x:2x2x1
jax: 0.10.0
libtpu: 0.0.40
codegen_flags: <defaults>
</compile_context>

<pallas_src>
import functools
import math

import jax
import jax.numpy as jnp
from jax import lax
from jax.experimental import pallas as pl
from jax.experimental.pallas import tpu as pltpu


# ---------------------------------------------------------------------------
# Generation-aware VMEM budget & tiling
# ---------------------------------------------------------------------------
def _vmem_budget():
    """Return (vmem_limit_bytes, attn-kernel tile prefer, kv-kernel tile prefer)."""
    try:
        cap = int(pltpu.get_tpu_info().vmem_capacity_bytes)
    except Exception:
        cap = 0
    if cap >= 100 * 1024 * 1024:            # v5e / v6e: 128 MiB physical VMEM
        return 96 * 1024 * 1024, 512, 1024
    if cap > 0:                             # v7x: 64 MiB physical VMEM per TC
        return 44 * 1024 * 1024, 256, 512
    return 48 * 1024 * 1024, 256, 512       # unknown backend: conservative defaults


def _pick_seq_tile(s, prefer, batch=1):
    """Largest tile <= prefer that divides S with a sublane-friendly (mult-of-8) size.

    Falls back to the full sequence if nothing fits.  If the resulting grid would have
    fewer than 2 steps (B==1, short S) the tile is shrunk so both v7x TensorCores work.
    """
    if s <= prefer:
        tile = s
    else:
        tile = s
        for t in range(min(prefer, s), 7, -1):
            if s % t == 0 and t % 8 == 0:
                tile = t
                break
    if batch * (s // tile) < 2:             # guarantee >= 2 parallel grid steps if possible
        for t in range(tile // 2, 7, -1):
            if s % t == 0 and t % 8 == 0:
                tile = t
                break
    return tile


def _cparams(vmem_limit_bytes):
    return pltpu.CompilerParams(
        dimension_semantics=("parallel", "parallel"),
        vmem_limit_bytes=vmem_limit_bytes,
    )


def _const_weight_spec(shape):
    """BlockSpec for a grid-invariant weight: single-buffered (no dead second copy)."""
    index_map = lambda b, s, _n=len(shape): (0,) * _n
    try:
        return pl.BlockSpec(shape, index_map, pipeline_mode=pl.Buffered(1))
    except (TypeError, AttributeError):     # older jax without pipeline_mode support
        return pl.BlockSpec(shape, index_map)


def _layernorm(t, alpha, bias, eps):
    """LayerNormalization of the PyTorch module (unbiased std, eps added to std)."""
    d = t.shape[-1]
    mean = jnp.mean(t, axis=-1, keepdims=True)
    var = jnp.sum((t - mean) ** 2, axis=-1, keepdims=True) * (1.0 / (d - 1))
    std = jnp.sqrt(var)
    return alpha * (t - mean) / (std + eps) + bias     # exact divide (accuracy)


# ---------------------------------------------------------------------------
# Kernel 1: LayerNorm1 + fused K/V projection, tiled over (batch, seq rows)
# ---------------------------------------------------------------------------
def ln_kv_kernel(x_ref, wkv_ref, ln1_ref, k_ref, v_ref, *, eps):
    x = x_ref[0]                              # (TKV, D) f32
    d = x.shape[-1]
    n1 = _layernorm(x, ln1_ref[0], ln1_ref[1], eps)
    # One wide MXU matmul (bf16 operands, f32 accumulation) for K and V together.
    kv = jnp.dot(n1.astype(jnp.bfloat16), wkv_ref[...],
                 preferred_element_type=jnp.float32)             # (TKV, 2D) f32
    k_ref[0] = kv[:, :d].astype(jnp.bfloat16)
    v_ref[0] = kv[:, d:].astype(jnp.bfloat16)


# ---------------------------------------------------------------------------
# Kernel 2: LN1 + Q projection (tile-local), attention (query tile vs. full K/V),
#           single K=D output projection, residual, LN2, feed-forward, residual,
#           and (last layer only) the final LayerNormalization.
# ---------------------------------------------------------------------------
def attn_ff_kernel(x_ref, k_ref, v_ref, mask_ref,
                   wq_ref, wo_ref, w1_ref, b1_ref, w2_ref, b2_ref,
                   ln1_ref, ln2_ref, *rest, n_heads, eps, apply_final_ln):
    if apply_final_ln:
        lnf_ref, out_ref = rest
    else:
        (out_ref,) = rest

    x = x_ref[0]                 # (TQ, D) f32   residual input
    k = k_ref[0]                 # (S,  D) bf16
    v = v_ref[0]                 # (S,  D) bf16
    tq, d = x.shape
    d_k = d // n_heads
    inv_sqrt_dk = 1.0 / math.sqrt(d_k)

    # --- LN1 + Q projection (Q never round-trips through HBM); fold 1/sqrt(d_k) in ---
    n1 = _layernorm(x, ln1_ref[0], ln1_ref[1], eps)
    q = (jnp.dot(n1.astype(jnp.bfloat16), wq_ref[...],
                 preferred_element_type=jnp.float32) * inv_sqrt_dk).astype(jnp.bfloat16)

    # Mask predicate hoisted out of the head loop; exact where() like the reference.
    mask_zero = mask_ref[0, 0].astype(jnp.float32) == 0.0        # (TQ, S) bool
    neg = jnp.float32(-10000.0)

    contract_last = (((1,), (1,)), ((), ()))    # q @ k^T without an explicit transpose
    ctx_parts = []
    for h in range(n_heads):                    # static unroll over heads
        lo = h * d_k
        qh = q[:, lo:lo + d_k]
        kh = k[:, lo:lo + d_k]
        vh = v[:, lo:lo + d_k]
        scores = lax.dot_general(qh, kh, contract_last,
                                 preferred_element_type=jnp.float32)             # (TQ, S)
        scores = jnp.where(mask_zero, neg, scores)
        # numerically-stable softmax (f32); divide replaced by EUP reciprocal
        scores = scores - jnp.max(scores, axis=-1, keepdims=True)
        p = jnp.exp(scores)
        p = p * pl.reciprocal(jnp.sum(p, axis=-1, keepdims=True), approx=True)
        ctx_parts.append(jnp.dot(p.astype(jnp.bfloat16), vh,
                                 preferred_element_type=jnp.float32))            # (TQ, d_k)

    # Concatenate head contexts and do ONE K=D output projection (full MXU width).
    ctx = jnp.concatenate(ctx_parts, axis=-1).astype(jnp.bfloat16)               # (TQ, D)
    attn_out = jnp.dot(ctx, wo_ref[...], preferred_element_type=jnp.float32)

    x1 = x + attn_out

    n2 = _layernorm(x1, ln2_ref[0], ln2_ref[1], eps)
    hdn = jnp.dot(n2.astype(jnp.bfloat16), w1_ref[...],
                  preferred_element_type=jnp.float32) + b1_ref[...]
    hdn = jnp.maximum(hdn, 0.0)
    ff = jnp.dot(hdn.astype(jnp.bfloat16), w2_ref[...],
                 preferred_element_type=jnp.float32) + b2_ref[...]
    x2 = x1 + ff

    if apply_final_ln:
        out_ref[0] = _layernorm(x2, lnf_ref[0], lnf_ref[1], eps)
    else:
        out_ref[0] = x2


# ---------------------------------------------------------------------------
# Host-side wrappers
# ---------------------------------------------------------------------------
def _encoder_layer(x, mask_i8, lp, *, n_heads, eps, tq, tkv, final_ln, vmem_limit):
    B, S, D = x.shape
    d_ff = lp["w1"].shape[1]

    # --- phase 1: LN1 + fused K/V projection -> k, v in bf16 --------------------
    kv_call = pl.pallas_call(
        functools.partial(ln_kv_kernel, eps=eps),
        out_shape=(jax.ShapeDtypeStruct((B, S, D), jnp.bfloat16),
                   jax.ShapeDtypeStruct((B, S, D), jnp.bfloat16)),
        grid_spec=pltpu.PrefetchScalarGridSpec(
            num_scalar_prefetch=0,
            grid=(B, S // tkv),
            in_specs=[
                pl.BlockSpec((1, tkv, D), lambda b, s: (b, s, 0)),      # x tile (f32)
                _const_weight_spec((D, 2 * D)),                         # fused wkv (bf16)
                pl.BlockSpec(memory_space=pltpu.MemorySpace.SMEM),      # ln1 scalars (2,)
            ],
            out_specs=[pl.BlockSpec((1, tkv, D), lambda b, s: (b, s, 0))] * 2,
        ),
        compiler_params=_cparams(vmem_limit),
    )
    k, v = kv_call(x, lp["wkv"], lp["ln1"])

    # --- phase 2: Q proj + attention + out-proj + residual + LN2 + FF + residual -
    apply_final = final_ln is not None
    in_specs = [
        pl.BlockSpec((1, tq, D), lambda b, s: (b, s, 0)),               # x residual tile
        pl.BlockSpec((1, S, D), lambda b, s: (b, 0, 0)),                # k full (bf16)
        pl.BlockSpec((1, S, D), lambda b, s: (b, 0, 0)),                # v full (bf16)
        pl.BlockSpec((1, 1, tq, S), lambda b, s: (b, 0, s, 0)),         # mask tile (int8)
        _const_weight_spec((D, D)),                                     # wq (bf16)
        _const_weight_spec((D, D)),                                     # wo (bf16)
        _const_weight_spec((D, d_ff)),                                  # w1 (bf16)
        _const_weight_spec((1, d_ff)),                                  # b1 (f32)
        _const_weight_spec((d_ff, D)),                                  # w2 (bf16)
        _const_weight_spec((1, D)),                                     # b2 (f32)
        pl.BlockSpec(memory_space=pltpu.MemorySpace.SMEM),              # ln1 scalars (2,)
        pl.BlockSpec(memory_space=pltpu.MemorySpace.SMEM),              # ln2 scalars (2,)
    ]
    args = [x, k, v, mask_i8, lp["wq"], lp["wo"], lp["w1"], lp["b1"], lp["w2"], lp["b2"],
            lp["ln1"], lp["ln2"]]
    if apply_final:
        in_specs.append(pl.BlockSpec(memory_space=pltpu.MemorySpace.SMEM))  # final ln (2,)
        args.append(final_ln)

    attn_call = pl.pallas_call(
        functools.partial(attn_ff_kernel, n_heads=n_heads, eps=eps,
                          apply_final_ln=apply_final),
        out_shape=jax.ShapeDtypeStruct((B, S, D), jnp.float32),
        grid_spec=pltpu.PrefetchScalarGridSpec(
            num_scalar_prefetch=0,
            grid=(B, S // tq),
            in_specs=in_specs,
            out_specs=pl.BlockSpec((1, tq, D), lambda b, s: (b, s, 0)),
        ),
        compiler_params=_cparams(vmem_limit),
    )
    return attn_call(*args)


def encoder_forward(x, src_mask, layer_params, final_ln_params, *, n_heads, eps=1e-6):
    """Encoder.forward: run every encoder block, then the final LayerNormalization
    (fused into the last block's kernel)."""
    B, S, D = x.shape
    assert D % n_heads == 0
    assert len(layer_params) >= 1
    vmem_limit, tq_prefer, tkv_prefer = _vmem_budget()
    tq = _pick_seq_tile(S, tq_prefer, batch=B)
    tkv = _pick_seq_tile(S, tkv_prefer, batch=B)
    assert S % tq == 0 and S % tkv == 0
    mask_i8 = src_mask.astype(jnp.int8)     # shrink mask DMA 4x vs int32
    n_layers = len(layer_params)
    for i, lp in enumerate(layer_params):
        fl = final_ln_params if i == n_layers - 1 else None
        x = _encoder_layer(x, mask_i8, lp, n_heads=n_heads, eps=eps,
                           tq=tq, tkv=tkv, final_ln=fl, vmem_limit=vmem_limit)
    return x


def pack_layer_params(p_f32):
    """Fuse wk/wv into one (D, 2D) weight and cast matmul weights to bf16."""
    return {
        "wq": p_f32["wq"].astype(jnp.bfloat16),
        "wkv": jnp.concatenate([p_f32["wk"], p_f32["wv"]], axis=1).astype(jnp.bfloat16),
        "wo": p_f32["wo"].astype(jnp.bfloat16),
        "w1": p_f32["w1"].astype(jnp.bfloat16),
        "b1": p_f32["b1"].astype(jnp.float32),
        "w2": p_f32["w2"].astype(jnp.bfloat16),
        "b2": p_f32["b2"].astype(jnp.float32),
        "ln1": p_f32["ln1"].astype(jnp.float32),   # (2,) = [alpha, bias]
        "ln2": p_f32["ln2"].astype(jnp.float32),
    }


# ---------------------------------------------------------------------------
# Pure-JAX (f32) reference matching the PyTorch forward (dropout = identity)
# ---------------------------------------------------------------------------
def encoder_ref(x, src_mask, layer_params_f32, final_ln, *, n_heads, eps=1e-6):
    B, S, D = x.shape
    d_k = D // n_heads

    def layernorm(t, alpha, bias):
        mean = jnp.mean(t, axis=-1, keepdims=True)
        var = jnp.sum((t - mean) ** 2, axis=-1, keepdims=True) / (D - 1)
        std = jnp.sqrt(var)
        return alpha * (t - mean) / (std + eps) + bias

    for p in layer_params_f32:
        n1 = layernorm(x, p["ln1"][0], p["ln1"][1])
        q = n1 @ p["wq"]
        k = n1 @ p["wk"]
        v = n1 @ p["wv"]
        q = q.reshape(B, S, n_heads, d_k).transpose(0, 2, 1, 3)
        k = k.reshape(B, S, n_heads, d_k).transpose(0, 2, 1, 3)
        v = v.reshape(B, S, n_heads, d_k).transpose(0, 2, 1, 3)
        scores = jnp.einsum("bhqd,bhkd->bhqk", q, k) / math.sqrt(d_k)
        scores = jnp.where(src_mask == 0, -10000.0, scores)
        pr = jax.nn.softmax(scores, axis=-1)
        attn = jnp.einsum("bhqk,bhkd->bhqd", pr, v)
        attn = attn.transpose(0, 2, 1, 3).reshape(B, S, D)
        x1 = x + attn @ p["wo"]
        n2 = layernorm(x1, p["ln2"][0], p["ln2"][1])
        h = jnp.maximum(n2 @ p["w1"] + p["b1"], 0.0)
        x = x1 + h @ p["w2"] + p["b2"]
    return layernorm(x, final_ln[0], final_ln[1])


if __name__ == "__main__":
    B, S, D, H, D_FF, N_LAYERS = 2, 8, 32, 4, 64, 2

    key = jax.random.PRNGKey(0)
    kx, kmask, kparams = jax.random.split(key, 3)

    x = jax.random.normal(kx, (B, S, D), dtype=jnp.float32)
    # deterministic 0/1 mask broadcast over heads; guarantee no fully-masked row
    mask = (jax.random.uniform(kmask, (B, 1, S, S)) > 0.2).astype(jnp.int32)
    eye = jnp.eye(S, dtype=jnp.int32)[None, None]
    mask = jnp.maximum(mask, eye)

    scale = 0.05
    layer_f32 = []
    for lkey in jax.random.split(kparams, N_LAYERS):
        ks = jax.random.split(lkey, 8)
        layer_f32.append({
            "wq": scale * jax.random.normal(ks[0], (D, D), jnp.float32),
            "wk": scale * jax.random.normal(ks[1], (D, D), jnp.float32),
            "wv": scale * jax.random.normal(ks[2], (D, D), jnp.float32),
            "wo": scale * jax.random.normal(ks[3], (D, D), jnp.float32),
            "w1": scale * jax.random.normal(ks[4], (D, D_FF), jnp.float32),
            "b1": scale * jax.random.normal(ks[5], (1, D_FF), jnp.float32),
            "w2": scale * jax.random.normal(ks[6], (D_FF, D), jnp.float32),
            "b2": scale * jax.random.normal(ks[7], (1, D), jnp.float32),
            # LayerNormalization init: alpha=1, bias=0
            "ln1": jnp.array([1.0, 0.0], jnp.float32),
            "ln2": jnp.array([1.0, 0.0], jnp.float32),
        })
    final_ln = jnp.array([1.0, 0.0], jnp.float32)

    packed = [pack_layer_params(p) for p in layer_f32]

    out = encoder_forward(x, mask, packed, final_ln, n_heads=H)
    out = jax.block_until_ready(out)

    ref = encoder_ref(x, mask, layer_f32, final_ln, n_heads=H)
    assert out.shape == (B, S, D)
    # bf16 matmul operands + approx EUP reciprocal in the softmax give ~1e-3-level
    # deviations vs the f32 reference; 2e-2 tolerance covers them with margin.
    max_err = float(jnp.max(jnp.abs(out - ref)))
    assert jnp.allclose(out, ref, atol=2e-2, rtol=2e-2), \
        f"mismatch vs JAX reference (max abs err {max_err})"

    print("KERNEL_OK")
</pallas_src>

<mosaic_0001>
module attributes {stable_mosaic.version = 11 : i64} {
  func.func @ln_kv_kernel(%arg0: i32, %arg1: i32, %arg2: memref<1x8x32xf32, #tpu.memory_space<vmem>>, %arg3: memref<32x64xbf16, #tpu.memory_space<vmem>>, %arg4: memref<2xf32, #tpu.memory_space<smem>>, %arg5: memref<1x8x32xbf16, #tpu.memory_space<vmem>>, %arg6: memref<1x8x32xbf16, #tpu.memory_space<vmem>>) attributes {dimension_semantics = [#tpu.dimension_semantics<parallel>, #tpu.dimension_semantics<parallel>], iteration_bounds = array<i64: 2, 1>, scalar_prefetch = 0 : i64, scratch_operands = 0 : i64, tpu.core_type = #tpu.core_type<tc>, window_params = [{transform_indices = @transform_0, window_bounds = array<i64: 1, 8, 32>}, {pipeline_mode = #tpu.pipeline_mode<synchronous>, transform_indices = @transform_1, window_bounds = array<i64: 32, 64>}, {transform_indices = @transform_2, window_bounds = array<i64: 2>}, {transform_indices = @transform_3, window_bounds = array<i64: 1, 8, 32>}, {transform_indices = @transform_4, window_bounds = array<i64: 1, 8, 32>}]} {
    %c0 = arith.constant 0 : index
    %c0_0 = arith.constant 0 : index
    %c0_1 = arith.constant 0 : index
    %0 = vector.load %arg2[%c0, %c0_0, %c0_1] : memref<1x8x32xf32, #tpu.memory_space<vmem>>, vector<1x8x32xf32>
    %1 = vector.shape_cast %0 : vector<1x8x32xf32> to vector<8x32xf32>
    %c0_2 = arith.constant 0 : index
    %2 = memref.load %arg4[%c0_2] : memref<2xf32, #tpu.memory_space<smem>>
    %c1 = arith.constant 1 : index
    %3 = memref.load %arg4[%c1] : memref<2xf32, #tpu.memory_space<smem>>
    %cst = arith.constant dense<0.000000e+00> : vector<8xf32>
    %4 = vector.multi_reduction <add>, %1, %cst [1] : vector<8x32xf32> to vector<8xf32>
    %5 = vector.shape_cast %4 : vector<8xf32> to vector<8x1xf32>
    %cst_3 = arith.constant 3.200000e+01 : f32
    %6 = vector.broadcast %cst_3 : f32 to vector<8x1xf32>
    %7 = arith.divf %5, %6 : vector<8x1xf32>
    %8 = vector.broadcast %7 : vector<8x1xf32> to vector<8x32xf32>
    %9 = arith.subf %1, %8 : vector<8x32xf32>
    %10 = arith.mulf %9, %9 : vector<8x32xf32>
    %cst_4 = arith.constant dense<0.000000e+00> : vector<8xf32>
    %11 = vector.multi_reduction <add>, %10, %cst_4 [1] : vector<8x32xf32> to vector<8xf32>
    %12 = vector.shape_cast %11 : vector<8xf32> to vector<8x1xf32>
    %cst_5 = arith.constant 0.0322580636 : f32
    %13 = vector.broadcast %cst_5 : f32 to vector<8x1xf32>
    %14 = arith.mulf %12, %13 : vector<8x1xf32>
    %15 = math.sqrt %14 : vector<8x1xf32>
    %16 = vector.broadcast %7 : vector<8x1xf32> to vector<8x32xf32>
    %17 = arith.subf %1, %16 : vector<8x32xf32>
    %18 = vector.broadcast %2 : f32 to vector<8x32xf32>
    %19 = arith.mulf %18, %17 : vector<8x32xf32>
    %cst_6 = arith.constant 9.99999997E-7 : f32
    %20 = vector.broadcast %cst_6 : f32 to vector<8x1xf32>
    %21 = arith.addf %15, %20 : vector<8x1xf32>
    %22 = vector.broadcast %21 : vector<8x1xf32> to vector<8x32xf32>
    %23 = arith.divf %19, %22 : vector<8x32xf32>
    %24 = vector.broadcast %3 : f32 to vector<8x32xf32>
    %25 = arith.addf %23, %24 : vector<8x32xf32>
    %26 = arith.truncf %25 : vector<8x32xf32> to vector<8x32xbf16>
    %c0_7 = arith.constant 0 : index
    %c0_8 = arith.constant 0 : index
    %27 = vector.load %arg3[%c0_7, %c0_8] : memref<32x64xbf16, #tpu.memory_space<vmem>>, vector<32x64xbf16>
    %cst_9 = arith.constant dense<0.000000e+00> : vector<8x64xf32>
    %28 = tpu.matmul %26, %27, %cst_9 {dimension_numbers = #tpu.dot_dimension_numbers<[1], [0], [0], [1], [0, 0, 1, 1], [], []>} : vector<8x32xbf16>, vector<32x64xbf16>, vector<8x64xf32> -> vector<8x64xf32>
    %29 = vector.extract_strided_slice %28 {offsets = [0, 0], sizes = [8, 32], strides = [1, 1]} : vector<8x64xf32> to vector<8x32xf32>
    %30 = arith.truncf %29 : vector<8x32xf32> to vector<8x32xbf16>
    %c0_10 = arith.constant 0 : index
    %c0_11 = arith.constant 0 : index
    %c0_12 = arith.constant 0 : index
    %31 = vector.load %arg5[%c0_10, %c0_11, %c0_12] : memref<1x8x32xbf16, #tpu.memory_space<vmem>>, vector<1x8x32xbf16>
    %32 = vector.shape_cast %31 : vector<1x8x32xbf16> to vector<8x32xbf16>
    %33 = vector.shape_cast %30 : vector<8x32xbf16> to vector<1x8x32xbf16>
    tpu.vector_store %arg5[%c0_10, %c0_11, %c0_12], %33 {strides = array<i32>} : memref<1x8x32xbf16, #tpu.memory_space<vmem>>, vector<1x8x32xbf16>,
    %34 = vector.extract_strided_slice %28 {offsets = [0, 32], sizes = [8, 32], strides = [1, 1]} : vector<8x64xf32> to vector<8x32xf32>
    %35 = arith.truncf %34 : vector<8x32xf32> to vector<8x32xbf16>
    %c0_13 = arith.constant 0 : index
    %c0_14 = arith.constant 0 : index
    %c0_15 = arith.constant 0 : index
    %36 = vector.load %arg6[%c0_13, %c0_14, %c0_15] : memref<1x8x32xbf16, #tpu.memory_space<vmem>>, vector<1x8x32xbf16>
    %37 = vector.shape_cast %36 : vector<1x8x32xbf16> to vector<8x32xbf16>
    %38 = vector.shape_cast %35 : vector<8x32xbf16> to vector<1x8x32xbf16>
    tpu.vector_store %arg6[%c0_13, %c0_14, %c0_15], %38 {strides = array<i32>} : memref<1x8x32xbf16, #tpu.memory_space<vmem>>, vector<1x8x32xbf16>,
    return
  }
  func.func @transform_0(%arg0: i32, %arg1: i32) -> (i32, i32, i32) {
    %c0_i32 = arith.constant 0 : i32
    %c0_i32_0 = arith.constant 0 : i32
    return %arg0, %arg1, %c0_i32 : i32, i32, i32
  }
  func.func @transform_1(%arg0: i32, %arg1: i32) -> (i32, i32) {
    %c0_i32 = arith.constant 0 : i32
    %c0_i32_0 = arith.constant 0 : i32
    %c0_i32_1 = arith.constant 0 : i32
    return %c0_i32, %c0_i32_0 : i32, i32
  }
  func.func @transform_2(%arg0: i32, %arg1: i32) -> i32 {
    %c0_i32 = arith.constant 0 : i32
    %c0_i32_0 = arith.constant 0 : i32
    return %c0_i32 : i32
  }
  func.func @transform_3(%arg0: i32, %arg1: i32) -> (i32, i32, i32) {
    %c0_i32 = arith.constant 0 : i32
    %c0_i32_0 = arith.constant 0 : i32
    return %arg0, %arg1, %c0_i32 : i32, i32, i32
  }
  func.func @transform_4(%arg0: i32, %arg1: i32) -> (i32, i32, i32) {
    %c0_i32 = arith.constant 0 : i32
    %c0_i32_0 = arith.constant 0 : i32
    return %arg0, %arg1, %c0_i32 : i32, i32, i32
  }
}

</mosaic_0001>

<bundles_post_ra>
// kernel: tpu_custom_call.1
= control target key start
LH: loop header
LB: loop body
LE: loop exit
PB: predicated region body
PF: predicated region fallthrough
CT: control target
= control target key end

     0   :  { %10 = vsyncpa [#allocation3], 0  ;;  %s1187_s0 = inlined_call_operand.hbm [shape: f32[2,8,32], index: 0, kind: input, shape index: {}]   ;;  %s1188_s1 = inlined_call_operand.hbm [shape: bf16[32,64], index: 1, kind: input, shape index: {}]   ;;  %s1189_s2 = inlined_call_operand.vmem [shape: f32[2], index: 2, kind: input, shape index: {}]   ;;  %s1190_s3 = inlined_call_operand.hbm [shape: bf16[2,8,32], index: 3, kind: output, shape index: {0}]   ;;  %s1191_s4 = inlined_call_operand.hbm [shape: bf16[2,8,32], index: 4, kind: output, shape index: {1}]  }
   0x1   :  { %12 = vsyncpa [#allocation3 + $0x1], 0 }
   0x2   :  { %13 = vsyncpa [#allocation7], 0 }
   0x3   :  { %14 = vsyncpa [#allocation5], 0 }
   0x4   :  { %15 = vsyncpa [#allocation4], 0 }
   0x5   :  { %17 = vsyncpa [#allocation4 + $0x1], 0 }
   0x6   :  { %18 = vsyncpa [#allocation11], 0 }
   0x7   :  { %20 = vsyncpa [#allocation11 + $0x1], 0  ;;  %s909_s15 = smov 0   ;;  %s911_s16 = smov 0  }
   0x8   :  { %s913_s17 = smov 0   ;;  %s915_s18 = smov 0  }
   0x9   :  { %s917_s19 = smov 0   ;;  %s919_s20 = smov 0  }
   0xa LB: > { %s541_s21 = sadd.s32 4294967295, %s872_s20   ;;  %s542_s22 = sadd.s32 4294967294, %s872_s20   ;;  %s872_s20 = sphi %s919_s20, %s26_s20   ;;  %s868_s19 = sphi %s917_s19, %s1214_s19   ;;  %s864_s18 = sphi %s915_s18, %s1213_s18   ;;  %s860_s17 = sphi %s913_s17, %s1212_s17   ;;  %s856_s16 = sphi %s911_s16, %s1211_s16   ;;  %s852_s15 = sphi %s909_s15, %s1210_s15  }
   0xb   : > { %p60_p0 = scmp.ne.s32.totalorder %s856_s16, %s852_s15  ;;  %p943_p1 = scmp.eq.s32.totalorder %s541_s21, 0 }
   0xc   : > { %p947_p2 = scmp.eq.s32.totalorder %s541_s21, 1  ;;  %p134_p3 = scmp.eq.s32.totalorder %s542_s22, 1 }
   0xd   : > { %s1196_s23 = scalar_select %p943_p1, 1, 0 }
   0xe   : > { %s1197_s24 = scalar_select %p947_p2, 1, 0 }
   0xf   : > { %p953_p4 = por %p943_p1, %p60_p0  ;;  %p543_p5 = scmp.ge.s32.totalorder %s872_s20, 1 }
  0x10   : > { %p958_p6 = por %p134_p3, %p60_p0  ;;  %p169_p7 = scmp.lt.s32.totalorder %s872_s20, 3 }
  0x11   : > { %s1198_s25 = scalar_select %p953_p4, 1, 0 }
  0x12   : > { %s1199_s26 = scalar_select %p958_p6, 1, 0 }
  0x13   : > { %p963_p8 = pnand %p543_p5, %p169_p7  ;;  %s874_s28 = smov [#allocation6]  }
  0x14   : > { %s181_s29 = sshll.u32 %s874_s28, 4  ;;  %s195_s6 = sshll.u32 %s1189_s2, 4  ;;  %s182_s29 = int_to_ptr.vmem [resolvable:$true] %s181_s29  ;;  %s979_s6 = int_to_ptr.vmem [resolvable:$true] %s195_s6 }
  0x15   : > { %s1200_s27 = scalar_select %p963_p8, 1, 0 }
  0x16   : > { %p592_p9 = pneg %p963_p8  ;;  %s677_s10 = scalar_lea.hbm %s1188_s1, 256 }
  0x17   : > { %p678_p12 = scmp.ne.s32.totalorder %s1188_s1, %s677_s10  ;;  %p684_p5 = scmp.lt.u32.totalorder %s677_s10, %s1188_s1 }
  0x18   : > { %p975_p11 = pnand %p592_p9, %p943_p1 }
  0x1a   : > { %p679_p13 = pneg %p975_p11 }
  0x1c   : > { %p680_p0 = pnand %p679_p13, %p678_p12 }
  0x1e   : > { %p681_p3 = pneg %p680_p0 }
  0x20   : > { %p686_p7 = pnand %p684_p5, %p681_p3 }
  0x22   : > { %689 = shalt.err (!%p686_p7)
}
  0x23   : > { %s690_s21 = scalar_lea.vmem %s182_s29, 256  ;;  %p698_p1 = scmp.lt.s32.totalorder %s182_s29, %s182_s29 }
  0x24   : > { %p691_p9 = scmp.ne.s32.totalorder %s182_s29, %s690_s21  ;;  %p699_p4 = scmp.lt.s32.totalorder %s690_s21, %s690_s21 }
  0x26   : > { %p693_p10 = pnand %p691_p9, %p679_p13  ;;  %p700_p8 = por %p699_p4, %p698_p1 }
  0x28   : > { %p694_p6 = pneg %p693_p10 }
  0x2a   : > { %p701_p2 = pnand %p700_p8, %p694_p6 }
  0x2c   : > { %704 = shalt.err (!%p701_p2)
}
  0x2d   : > { %s875_s22 = smov 64   ;;  %s876_s28 = smov 4  }
  0x2e   : > { %595 = dma.hbm_to_vmem [thread:$0]  (!%p975_p11), %s1188_s1, 256, %s182_s29, [#allocation7], %s875_s22, %s875_s22, %s876_s28  }
  0x2f   : > { %s705_s8 = scalar_lea.vmem %s979_s6, 16  ;;  %p713_p2 = scmp.lt.s32.totalorder %s979_s6, %s979_s6 }
  0x30   : > { %p706_p12 = scmp.ne.s32.totalorder %s979_s6, %s705_s8  ;;  %p714_p4 = scmp.lt.s32.totalorder %s705_s8, %s705_s8 }
  0x32   : > { %p708_p10 = pnand %p706_p12, %p679_p13  ;;  %p715_p6 = por %p714_p4, %p713_p2 }
  0x34   : > { %p709_p1 = pneg %p708_p10 }
  0x36   : > { %p716_p8 = pnand %p715_p6, %p709_p1 }
  0x38   : > { %719 = shalt.err (!%p716_p8)
}
  0x39   : > { %s877_s9 = smov [#allocation8]   ;;  %s38_s29 = sadd.s32 1, %s868_s19 }
  0x3a   : > { %598 = dma.vmem_to_smem (!%p975_p11), %s979_s6, 16, %s877_s9, [#allocation5]  }
  0x3b   : > { %s47_s10 = sadd.s32 1, %s860_s17  ;;  %p40_p13 = scmp.ge.s32.totalorder %s38_s29, 2 }
  0x3c   : > { %p54_p0 = scmp.ne.s32.totalorder %s860_s17, %s856_s16  ;;  %p55_p3 = scmp.eq.s32.totalorder %s872_s20, 0 }
  0x3d   : > { %p612_p5 = scmp.lt.s32.totalorder %s872_s20, 2  ;;  %s1216_s29 = smov (%p40_p13, %s38_s29), 0 }
  0x3e   : > { %p56_p7 = por %p55_p3, %p54_p0  ;;  %p1202_p9 = scmp.ne.s32.totalorder %s1197_s24, 0 }
  0x3f   : > { %s42_s11 = ssub.s32 %s868_s19, %s1216_s29  ;;  %s206_s12 = sand.u32 1, %s860_s17  }
  0x40   : > { %p1023_p12 = por %p1202_p9, %p54_p0  ;;  %p45_p10 = scmp.eq.s32.totalorder %s42_s11, 0 }
  0x41   : > { %s547_s6 = sshll.u32 %s206_s12, 3  ;;  %s548_s13 = sshll.u32 %s868_s19, 7 }
  0x42   : > { %s1032_s14 = scalar_select %p45_p10, %s860_s17, %s47_s10  }
  0x43   : > { %s1037_s28 = scalar_lea.hbm %s1187_s0, %s548_s13  ;;  %s210_s24 = scalar_lea.vmem [#allocation2], %s547_s6 }
  0x44   : > { %s218_s30 = sshll.u32 %s210_s24, 4  ;;  %p1041_p11 = pnand %p612_p5, %p56_p7  ;;  %s1045_s30 = int_to_ptr.vmem [resolvable:$true] %s218_s30 }
  0x45   : > { %s207_s8 = scalar_lea.sflag [#allocation3], %s206_s12  ;;  %s720_s9 = scalar_lea.hbm %s1037_s28, 128 }
  0x46   : > { %p721_p1 = scmp.ne.s32.totalorder %s1037_s28, %s720_s9  ;;  %p722_p2 = pneg %p1041_p11 }
  0x47   : > { %s725_s6 = scalar_lea.hbm %s1187_s0, 256  ;;  %p726_p8 = scmp.lt.u32.totalorder %s1037_s28, %s1187_s0 }
  0x48   : > { %p723_p4 = pnand %p722_p2, %p721_p1  ;;  %p727_p13 = scmp.lt.u32.totalorder %s725_s6, %s720_s9 }
  0x49   : > { %p729_p3 = scmp.lt.u32.totalorder %s720_s9, %s1037_s28 }
  0x4a   : > { %p724_p6 = pneg %p723_p4  ;;  %p728_p0 = por %p727_p13, %p726_p8 }
  0x4c   : > { %p730_p5 = por %p729_p3, %p728_p0 }
  0x4e   : > { %p731_p7 = pnand %p730_p5, %p724_p6 }
  0x50   : > { %734 = shalt.err (!%p731_p7)
}
  0x51   : > { %s735_s12 = scalar_lea.vmem %s1045_s30, 128  ;;  %s878_s22 = smov [#allocation2]  }
  0x52   : > { %p736_p9 = scmp.ne.s32.totalorder %s1045_s30, %s735_s12  ;;  %s740_s24 = sshll.u32 %s878_s22, 4  ;;  %s741_s24 = int_to_ptr.vmem [resolvable:$false] %s740_s24 }
  0x53   : > { %s742_s10 = scalar_lea.vmem %s741_s24, 256  ;;  %p743_p4 = scmp.lt.s32.totalorder %s1045_s30, %s741_s24 }
  0x54   : > { %p738_p10 = pnand %p736_p9, %p722_p2  ;;  %p744_p8 = scmp.lt.s32.totalorder %s742_s10, %s735_s12 }
  0x56   : > { %p739_p1 = pneg %p738_p10  ;;  %p745_p13 = por %p744_p8, %p743_p4 }
  0x58   : > { %p746_p0 = pnand %p745_p13, %p739_p1 }
  0x5a   : > { %749 = shalt.err (!%p746_p0)
}
  0x5b   : > { %602 = dma.hbm_to_vmem [thread:$0]  (!%p1041_p11), %s1037_s28, 128, %s1045_s30, %s207_s8  }
  0x5c   : > { %p1205_p6 = scmp.ne.s32.totalorder %s1200_s27, 0 }
  0x5d   : > { %s1075_s9 = sand.u32 (!%p1205_p6), 1, %s856_s16   ;;  %p1206_p2 = scmp.ne.s32.totalorder (!%p1205_p6), %s1198_s25, 0 }
  0x5e   : > { %227 = sbr.rel (%p1205_p6) target bundleno = 781 (0x30d), region = 32  ;;  %s550_s11 = sshll.u32 (!%p1205_p6), %s1075_s9, 3 }
  0x5f   : > { %s230_s6 = scalar_lea.sflag (!%p1205_p6), [#allocation3], %s1075_s9  ;;  %s233_s13 = scalar_lea.vmem (!%p1205_p6), [#allocation2], %s550_s11 }
  0x65   : > { %831 = dma.done.wait (%p1206_p2), %s230_s6, 128  }
  0x66   : > { %833 = vsyncadd (%p1206_p2), %s230_s6, 4294967168  ;;  %p1207_p3 = scmp.ne.s32.totalorder %s1196_s23, 0 }
  0x68   : > { %835 = dma.done.wait (%p1207_p3), [#allocation7], 256  }
  0x69   : > { %837 = vsyncadd (%p1207_p3), [#allocation7], 4294967040 }
  0x6a   : > { %839 = dma.done.wait (%p1207_p3), [#allocation5], 16  }
  0x6b   : > { %841 = vsyncadd (%p1207_p3), [#allocation5], 4294967280 }
  0x6c   : > { %246 = sfence }
  0x6d   : > { %v273_v0 = vld [vmem:[%s233_s13] sm:$0xff]  ;;  %vm276_vm0 = vcmask 261120   ;;  %v671_v7 = vld [vmem:[#allocation6] sm:$0xff]   ;;  %v879_v8 = vmov 0.0   ;;  %vm880_vm1 = vmmov 0   ;;  %v672_v9 = vld [vmem:[#allocation6 + $0x8] sm:$0xff]  }
  0x6e   : > { %v277_v1 = vsel %vm276_vm0, %v273_v0, 0.0  ;;  %570 = vmatprep.subr.bf16.mxu0 %v879_v8  ;;  %574 = vmatprep.mubr.msk.bf16.mxu0 %vm880_vm1, %v879_v8  ;;  %s274_s23 = sld [smem:[#allocation8]]  ;;  %s555_s25 = sld [smem:[#allocation8 + $0x1]]  ;;  %vm363_vm4 = vcmask 257024  }
  0x6f   : > { %278 = vadd.xlane.f32.xlu0 %v277_v1  ;;  %571 = vmatpush3.bf16.msra.mxu0 %v671_v7  ;;  %s553_s27 = sshll.u32 %s1075_s9, 2  ;;  %s562_s28 = sshll.u32 %s864_s18, 6 }
  0x70   : > { %572 = vmatprep.subr.bf16.mxu0 %v879_v8  ;;  %s264_s30 = scalar_lea.vmem [#allocation9], %s553_s27  ;;  %s1103_s12 = scalar_lea.hbm %s1190_s3, %s562_s28 }
  0x71   : > { %s392_s5 = sshll.u32 %s264_s30, 4  ;;  %s881_s22 = smov 96   ;;  %s1105_s5 = int_to_ptr.vmem [resolvable:$true] %s392_s5 }
  0x72   : > { %s373_s24 = scalar_lea.sflag [#allocation4], %s1075_s9  ;;  %s750_s10 = scalar_lea.vmem %s1105_s5, 64 }
  0x73   : > { %573 = vmatpush3.bf16.msra.mxu0 %v672_v9  ;;  %p751_p11 = scmp.ne.s32.totalorder %s1105_s5, %s750_s10  ;;  %s882_s11 = smov [#allocation9]  }
  0x74   : > { %v295_v18 = vstv %s274_s23  ;;  %v300_v21 = vstv %s555_s25  ;;  %s754_s6 = sshll.u32 %s882_s11, 4  ;;  %s755_s6 = int_to_ptr.vmem [resolvable:$false] %s754_s6 }
  0x75   : > { %p752_p5 = pnand %p751_p11, %p1023_p12  ;;  %s756_s13 = scalar_lea.vmem %s755_s6, 128 }
  0x76   : > { %p757_p9 = scmp.lt.s32.totalorder %s1105_s5, %s755_s6  ;;  %p758_p10 = scmp.lt.s32.totalorder %s756_s13, %s750_s10 }
  0x77   : > { %p753_p7 = pneg %p752_p5 }
  0x78   : > { %p759_p1 = por %p758_p10, %p757_p9 }
  0x7a   : > { %p760_p4 = pnand %p759_p1, %p753_p7 }
  0xfc   : > { %v279_v2 = vpop.xlane.xlu0 %278 }
  0xfd   : > { %v281_v3 = vmul.f32 0.03125, %v279_v2 }
  0xff   : > { %v282_v4 = vsub.f32 %v273_v0, %v281_v3 }
 0x101   : > { %v283_v5 = vmul.f32 %v282_v4, %v282_v4  ;;  %v296_v19 = vmul.f32 %v295_v18, %v282_v4 }
 0x103   : > { %v284_v6 = vsel %vm276_vm0, %v283_v5, 0.0 }
 0x104   : > { %285 = vadd.xlane.f32.xlu0 %v284_v6 }
 0x191   : > { %v286_v10 = vpop.xlane.xlu0 %285 }
 0x192   : > { %v287_v11 = vmul.f32 0.032258064, %v286_v10 }
 0x194   : > { %673 = vrsqrt.f32 %v287_v11  ;;  %vm290_vm2 = vcmp.eq.f32.partialorder %v287_v11, inf  ;;  %v293_v14 = vand.u32 2147483648, %v287_v11  ;;  %vm292_vm3 = vcmp.eq.f32.partialorder %v287_v11, 0.0 }
 0x19e   : > { %v674_v12 = vpop.eup %673 }
 0x19f   : > { %v289_v13 = vmul.f32 %v674_v12, %v287_v11 }
 0x1a1   : > { %v291_v15 = vsel %vm290_vm2, %v287_v11, %v289_v13 }
 0x1a2   : > { %v294_v16 = vsel %vm292_vm3, %v293_v14, %v291_v15 }
 0x1a3   : > { %v297_v17 = vadd.f32 1e-06, %v294_v16 }
 0x1a5   : > { %675 = vrcp.f32 %v297_v17 }
 0x1af   : > { %v676_v20 = vpop.eup %675 }
 0x1b0   : > { %v299_v22 = vmul.f32 %v676_v20, %v296_v19 }
 0x1b2   : > { %v301_v23 = vadd.f32 %v300_v21, %v299_v22 }
 0x1b4   : > { %v302_v24 = vpack.c.bf16 %v301_v23, %v301_v23 }
 0x1b6   : > { %575 = vmatmul.mubr.msk.bf16.vlgmr.msra.gmra.mrb[0].mxu0 %vm276_vm0, %v302_v24 }
 0x289   : > { %v356_v25 = vpop.f32.mrb[0].mxu0 }
 0x28a   : > { %v362_v26 = vpack.c.bf16 %v356_v25, %v356_v25  ;;  %v576_v27 = vpop.f32.mrb[1].mxu0 }
 0x28b   : > { %v359_v28 = vpop.f32.mrb[2].mxu0 }
 0x28c   : > { %368 = vrot.lane.b32.xlu1 %v362_v26, %s881_s22  ;;  %v577_v29 = vpop.f32.mrb[3].mxu0  ;;  %364 = vst.msk [vmem:[%s264_s30] sm:$0xf] %vm363_vm4, %v362_v26 }
 0x28d   : > { %763 = shalt.err (!%p760_p4)
}
 0x28e   : > { %s764_s23 = scalar_lea.hbm %s1103_s12, 64  ;;  %s768_s8 = scalar_lea.hbm %s1190_s3, 128 }
 0x28f   : > { %p765_p8 = scmp.ne.s32.totalorder %s1103_s12, %s764_s23  ;;  %p769_p6 = scmp.lt.u32.totalorder %s1103_s12, %s1190_s3 }
 0x290   : > { %p770_p2 = scmp.lt.u32.totalorder %s768_s8, %s764_s23  ;;  %p772_p11 = scmp.lt.u32.totalorder %s764_s23, %s1103_s12 }
 0x291   : > { %p766_p13 = pnand %p765_p8, %p1023_p12 }
 0x292   : > { %p771_p3 = por %p770_p2, %p769_p6 }
 0x293   : > { %p767_p0 = pneg %p766_p13 }
 0x294   : > { %p773_p5 = por %p772_p11, %p771_p3 }
 0x296   : > { %p774_p7 = pnand %p773_p5, %p767_p0 }
 0x298   : > { %777 = shalt.err (!%p774_p7)
}
 0x299   : > { %588 = dma.vmem_to_hbm [thread:$0]  (%p1023_p12), %s1105_s5, 64, %s1103_s12, %s373_s24  }
 0x29a   : > { %s271_s10 = scalar_lea.vmem [#allocation10], %s553_s27  ;;  %s1137_s23 = scalar_lea.hbm %s1191_s4, %s562_s28 }
 0x29b   : > { %s406_s11 = sshll.u32 %s271_s10, 4  ;;  %s378_s25 = scalar_lea.sflag [#allocation11], %s1075_s9  ;;  %s1139_s11 = int_to_ptr.vmem [resolvable:$true] %s406_s11 }
 0x29c   : > { %s778_s30 = scalar_lea.vmem %s1139_s11, 64  ;;  %s883_s18 = smov [#allocation10]  }
 0x29d   : > { %p779_p9 = scmp.ne.s32.totalorder %s1139_s11, %s778_s30  ;;  %s782_s27 = sshll.u32 %s883_s18, 4  ;;  %s783_s27 = int_to_ptr.vmem [resolvable:$false] %s782_s27 }
 0x29e   : > { %s784_s5 = scalar_lea.vmem %s783_s27, 128  ;;  %p785_p4 = scmp.lt.s32.totalorder %s1139_s11, %s783_s27 }
 0x29f   : > { %p780_p10 = pnand %p779_p9, %p1023_p12  ;;  %p786_p8 = scmp.lt.s32.totalorder %s784_s5, %s778_s30 }
 0x2a1   : > { %p781_p1 = pneg %p780_p10  ;;  %p787_p13 = por %p786_p8, %p785_p4 }
 0x2a3   : > { %p788_p0 = pnand %p787_p13, %p781_p1 }
 0x2fe   : > { %v369_v30 = vpop.permute.xlu1 %368 }
 0x2ff   : > { %371 = vst.msk [vmem:[%s271_s10] sm:$0xf] %vm363_vm4, %v369_v30 }
 0x300   : > { %791 = shalt.err (!%p788_p0)
}
 0x301   : > { %s792_s9 = scalar_lea.hbm %s1137_s23, 64  ;;  %s796_s24 = scalar_lea.hbm %s1191_s4, 128 }
 0x302   : > { %p793_p6 = scmp.ne.s32.totalorder %s1137_s23, %s792_s9  ;;  %p797_p11 = scmp.lt.u32.totalorder %s1137_s23, %s1191_s4 }
 0x303   : > { %p798_p5 = scmp.lt.u32.totalorder %s796_s24, %s792_s9  ;;  %p800_p9 = scmp.lt.u32.totalorder %s792_s9, %s1137_s23 }
 0x304   : > { %p794_p2 = pnand %p793_p6, %p1023_p12 }
 0x305   : > { %p799_p7 = por %p798_p5, %p797_p11 }
 0x306   : > { %p795_p3 = pneg %p794_p2 }
 0x307   : > { %p801_p10 = por %p800_p9, %p799_p7 }
 0x309   : > { %p802_p1 = pnand %p801_p10, %p795_p3 }
 0x30b   : > { %805 = shalt.err (!%p802_p1)
}
 0x30c   : > { %589 = dma.vmem_to_hbm [thread:$0]  (%p1023_p12), %s1139_s11, 64, %s1137_s23, %s378_s25  }
 0x30d PF: > { %s418_s22 = sand.u32 1, %s852_s15   ;;  %p1208_p4 = scmp.ne.s32.totalorder %s1199_s26, 0 }
 0x30e   : > { %p1209_p8 = scmp.ge.s32.totalorder %s872_s20, 2  ;;  %s419_s10 = scalar_lea.sflag [#allocation4], %s418_s22 }
 0x310   : > { %p604_p13 = pnand %p1209_p8, %p1208_p4 }
 0x312   : > { %843 = dma.done.wait (!%p604_p13), %s419_s10, 64  }
 0x313   : > { %845 = vsyncadd (!%p604_p13), %s419_s10, 4294967232  ;;  %s428_s6 = scalar_lea.sflag [#allocation11], %s418_s22 }
 0x314   : > { %847 = dma.done.wait (!%p604_p13), %s428_s6, 64  }
 0x315   : > { %849 = vsyncadd (!%p604_p13), %s428_s6, 4294967232  ;;  %s26_s20 = sadd.s32 1, %s872_s20   ;;  %s1210_s15 = smov %s856_s16 }
 0x316   : > { %p23_p0 = scmp.ge.s32.totalorder %s26_s20, 4   ;;  %s1211_s16 = smov %s860_s17 }
 0x317   : > { %s1212_s17 = smov %s1032_s14  ;;  %s1213_s18 = smov %s868_s19 }
 0x318   : > { %s1214_s19 = smov %s1216_s29  ;;  %25 = sbr.rel (!%p23_p0) target bundleno = 10 (0xa), region = 103 }
 0x31f   :  { %433 = vsyncpa [#allocation3], 1 }
 0x320   :  { %435 = vsyncpa [#allocation3 + $0x1], 1 }
 0x321   :  { %436 = vsyncpa [#allocation7], 1 }
 0x322   :  { %437 = vsyncpa [#allocation4], 1 }
 0x323   :  { %439 = vsyncpa [#allocation4 + $0x1], 1 }
 0x324   :  { %440 = vsyncpa [#allocation11], 1 }
 0x325   :  { %442 = vsyncpa [#allocation11 + $0x1], 1 }
 0x326   :  { %443 = vsyncpa [#allocation5], 1 }
 0x327   :  { %445 = vsyncpa [#allocation5 + $0x1], 1 }

</bundles_post_ra>
